<compile_context>
chip_gen: v5e
topology: v5e:2x2
jax: 0.10.0
libtpu: 0.0.40
codegen_flags: <defaults>
</compile_context>

<pallas_src>
import functools

import jax
import jax.numpy as jnp
from jax import lax
from jax.experimental import pallas as pl
from jax.experimental.pallas import tpu as pltpu


# --------------------------------------------------------------------------
# small helpers
# --------------------------------------------------------------------------
def _round_up(x, m):
    return (x + m - 1) // m * m


def _cdiv(a, b):
    return (a + b - 1) // b


def _sublane_multiple(dtype):
    # Minimum second-to-last tile dim: 8 (32-bit), 16 (16-bit), 32 (8-bit).
    return max(8, 32 // jnp.dtype(dtype).itemsize)


def _pow_p(x, p):
    """x**p for x >= eps > 0, avoiding the exp/log EUP path when possible."""
    if float(p).is_integer() and 1.0 <= p <= 64.0:
        return lax.integer_pow(x, int(p))            # VPU multiply chain (p=3,...)
    if float(2.0 * p).is_integer() and 0.5 <= p <= 64.0:
        ip = int(p)                                  # half-integer: x**ip * sqrt(x)
        r = jnp.sqrt(x)
        return r if ip == 0 else lax.integer_pow(x, ip) * r
    return jnp.power(x, p)                           # general float exponent (EUP)


def _root_p(m, p):
    """m**(1/p) on the tiny reduced tile (negligible EUP work)."""
    if p == 1.0:
        return m
    if p == 2.0:
        return jnp.sqrt(m)
    if p == 4.0:
        return jnp.sqrt(jnp.sqrt(m))
    return jnp.power(m, 1.0 / p)


def _budgets(target_block_bytes):
    """Generation-aware (target tile bytes, vmem_limit_bytes)."""
    try:
        vmem_cap = int(getattr(pltpu.get_tpu_info(), "vmem_capacity_bytes",
                               64 * 1024 * 1024))
    except Exception:  # pragma: no cover - interpret mode / older jax
        vmem_cap = 64 * 1024 * 1024
    if vmem_cap >= 96 * 1024 * 1024:          # v5e / v6e: 128 MiB physical VMEM
        target, limit = 12 * 1024 * 1024, 64 * 1024 * 1024
    else:                                     # v7x: 64 MiB per TensorCore
        target, limit = 8 * 1024 * 1024, 48 * 1024 * 1024
    if target_block_bytes is not None:
        target = int(target_block_bytes)
        limit = max(limit, min(6 * target, vmem_cap * 3 // 4))
    return target, limit


def _choose_fold(hw, sm, target_bytes, waste_cap=1.0 / 16.0,
                 seg_cap_bytes=4 * 1024 * 1024):
    """Planes folded per kernel row (1 => no folding / chunked path)."""
    best = 1
    best_waste = (_round_up(hw, 128) - hw) / hw
    if best_waste <= waste_cap:               # hw already ~lane aligned
        return 1
    for g in (2, 4, 8, 16, 32, 64, 128):
        width = g * hw
        if width * g * 4 > seg_cap_bytes:                     # seg matrix cap
            break
        if _round_up(width, 128) * 4 * sm > target_bytes:     # sm rows must fit
            break
        waste = (_round_up(width, 128) - width) / width
        if waste < best_waste:
            best, best_waste = g, waste
        if waste <= waste_cap:
            return g
    return best


def _pick_block_rows(rows, bytes_per_row, sm, target_bytes, min_grid):
    """Row-tile height: multiple of sm (or == rows), ~target_bytes per tile,
    >= min_grid grid steps when rows allow, preferring exact divisors."""
    if rows <= sm:
        return rows                                    # single full-height block
    bm = max(sm, int(target_bytes // max(bytes_per_row, 1)) // sm * sm)
    if rows >= min_grid * sm:                          # keep both v7x TCs busy
        bm = min(bm, max(sm, (rows // min_grid) // sm * sm))
    bm = min(bm, max(sm, rows // sm * sm))
    if rows % sm == 0:                                 # avoid a ragged last block
        d = bm
        while d > sm and rows % d:
            d -= sm
        if d * 2 >= bm:                                # ...if it stays a big tile
            bm = d
    return bm


# --------------------------------------------------------------------------
# kernels
# --------------------------------------------------------------------------
def _gem_folded_kernel(x_ref, seg_ref, o_ref, *, p, eps, inv_hw):
    # x_ref: (bm, g*hw) folded tile; seg_ref: (g*hw, g) constant 0/1 matrix.
    x = jnp.maximum(x_ref[...].astype(jnp.float32), eps)     # clamp(min=eps)
    xp = _pow_p(x, p)
    # MXU segmented reduce over each hw-long segment -> lane-dense (bm, g).
    s = jnp.dot(xp, seg_ref[...],
                preferred_element_type=jnp.float32,
                precision=lax.Precision.HIGHEST)
    o_ref[...] = _root_p(s * inv_hw, p).astype(o_ref.dtype)


def _gem_chunked_kernel(x_ref, o_ref, acc_ref, *, p, eps, inv_hw, hw, chunk,
                        ragged):
    # x_ref: (bm, chunk) tile, grid = (row blocks, hw chunks); acc: (bm, 1) f32.
    k = pl.program_id(1)

    @pl.when(k == 0)
    def _():
        acc_ref[...] = jnp.zeros_like(acc_ref)

    x = jnp.maximum(x_ref[...].astype(jnp.float32), eps)     # clamp(min=eps)
    xp = _pow_p(x, p)
    if ragged:
        # hw not a multiple of the chunk: zero out-of-range columns (select,
        # so inf/NaN from padded reads never reach the sum).
        col = k * chunk + lax.broadcasted_iota(jnp.int32, xp.shape, 1)
        xp = jnp.where(col < hw, xp, 0.0)
    acc_ref[...] += jnp.sum(xp, axis=-1, keepdims=True)

    @pl.when(k == pl.num_programs(1) - 1)
    def _():
        o_ref[...] = _root_p(acc_ref[...] * inv_hw, p).astype(o_ref.dtype)


# --------------------------------------------------------------------------
# path drivers
# --------------------------------------------------------------------------
def _gem_folded(x2d, rows, hw, g, p, eps, dtype, itemsize, sm, target,
                vmem_limit, min_grid):
    rows_pad = _round_up(rows, g)
    if rows_pad != rows:
        # Rare (channel count not a multiple of g): eps-padded planes produce
        # benign outputs that are sliced off by the caller.
        x2d = jnp.pad(x2d, ((0, rows_pad - rows), (0, 0)), constant_values=eps)
    rows_f = rows_pad // g
    width = g * hw
    xf = x2d.reshape(rows_f, width)                   # free, contiguous reshape

    # Constant 0/1 segment matrix: width position q belongs to plane q // hw.
    seg = (jnp.arange(width, dtype=jnp.int32)[:, None] // hw
           == jnp.arange(g, dtype=jnp.int32)[None, :]).astype(jnp.float32)

    bm = _pick_block_rows(rows_f, _round_up(width, 128) * itemsize, sm,
                          target, min_grid)
    grid_m = _cdiv(rows_f, bm)

    kernel = functools.partial(_gem_folded_kernel, p=p, eps=eps,
                               inv_hw=1.0 / float(hw))
    return pl.pallas_call(
        kernel,
        out_shape=jax.ShapeDtypeStruct((rows_f, g), dtype),
        grid_spec=pltpu.PrefetchScalarGridSpec(
            num_scalar_prefetch=0,
            grid=(grid_m,),
            in_specs=[
                pl.BlockSpec((bm, width), lambda i: (i, 0)),
                pl.BlockSpec((width, g), lambda i: (0, 0)),   # resident constant
            ],
            out_specs=pl.BlockSpec((bm, g), lambda i: (i, 0)),
        ),
        compiler_params=pltpu.CompilerParams(
            dimension_semantics=("parallel",),
            vmem_limit_bytes=vmem_limit,
        ),
    )(xf, seg)


def _gem_chunked(x2d, rows, hw, p, eps, dtype, itemsize, sm, target,
                 vmem_limit, min_grid):
    lane_hw = _round_up(hw, 128)
    if lane_hw * itemsize * sm <= target:
        chunk = hw                                     # full width, single k step
    else:
        chunk = max(128, (target // (itemsize * sm)) // 128 * 128)
    num_k = _cdiv(hw, chunk)
    ragged = (hw % chunk) != 0

    bm = _pick_block_rows(rows, min(lane_hw, _round_up(chunk, 128)) * itemsize,
                          sm, target, min_grid)
    grid_m = _cdiv(rows, bm)

    kernel = functools.partial(_gem_chunked_kernel, p=p, eps=eps,
                               inv_hw=1.0 / float(hw), hw=hw, chunk=chunk,
                               ragged=ragged)
    return pl.pallas_call(
        kernel,
        out_shape=jax.ShapeDtypeStruct((rows, 1), dtype),
        grid_spec=pltpu.PrefetchScalarGridSpec(
            num_scalar_prefetch=0,
            grid=(grid_m, num_k),
            in_specs=[pl.BlockSpec((bm, chunk), lambda i, k: (i, k))],
            out_specs=pl.BlockSpec((bm, 1), lambda i, k: (i, 0)),
            scratch_shapes=[pltpu.VMEM((bm, 1), jnp.float32)],
        ),
        compiler_params=pltpu.CompilerParams(
            dimension_semantics=("parallel", "arbitrary"),
            vmem_limit_bytes=vmem_limit,
        ),
    )(x2d)


# --------------------------------------------------------------------------
# public wrapper
# --------------------------------------------------------------------------
def generalized_mean_pooling(x, norm=3.0, eps=1e-6, *, target_block_bytes=None,
                             min_grid=4):
    """GeM pooling with output_size=1: (N, C, H, W) -> (N, C, 1, 1)."""
    # TODO(synk): general output_size != 1 (adaptive pooling to an HxW grid) is
    # not implemented; the reference module is used with output_size=1.
    n, c, h, w = x.shape
    rows, hw = n * c, h * w
    p = float(norm)
    assert p > 0.0
    eps = float(eps)
    dtype = x.dtype
    itemsize = max(jnp.dtype(dtype).itemsize, 4)   # f32 temporaries dominate VMEM
    sm = _sublane_multiple(dtype)
    target, vmem_limit = _budgets(target_block_bytes)

    x2d = x.reshape(rows, hw)
    g = _choose_fold(hw, sm, target)

    if g > 1:
        out2d = _gem_folded(x2d, rows, hw, g, p, eps, dtype, itemsize, sm,
                            target, vmem_limit, min_grid)
    else:
        out2d = _gem_chunked(x2d, rows, hw, p, eps, dtype, itemsize, sm,
                             target, vmem_limit, min_grid)
    return out2d.reshape(-1)[:rows].reshape(n, c, 1, 1)


# --------------------------------------------------------------------------
# reference + self-test
# --------------------------------------------------------------------------
def _reference(x, norm=3.0, eps=1e-6):
    xp = jnp.power(jnp.maximum(x.astype(jnp.float32), eps), norm)
    m = jnp.mean(xp, axis=(2, 3), keepdims=True)
    return jnp.power(m, 1.0 / norm).astype(x.dtype)


if __name__ == "__main__":
    key = jax.random.PRNGKey(0)
    k1, k2, k3, k4 = jax.random.split(key, 4)

    # 1) Lane-aligned spatial extent (16x16): chunked path, single spatial chunk.
    x1 = jax.random.uniform(k1, (2, 4, 16, 16), dtype=jnp.float32)
    o1 = jax.block_until_ready(generalized_mean_pooling(x1, norm=3.0))
    r1 = _reference(x1, norm=3.0)
    assert o1.shape == (2, 4, 1, 1), o1.shape
    assert jnp.allclose(o1, r1, atol=1e-5, rtol=1e-5), (
        float(jnp.max(jnp.abs(o1 - r1))))

    # 2) Non-aligned 7x7 spatial extent: folded path (MXU segmented reduce).
    x2 = jax.random.uniform(k2, (2, 64, 7, 7), dtype=jnp.float32)
    o2 = jax.block_until_ready(generalized_mean_pooling(x2, norm=3.0))
    r2 = _reference(x2, norm=3.0)
    assert o2.shape == (2, 64, 1, 1), o2.shape
    assert jnp.allclose(o2, r2, atol=1e-5, rtol=1e-5), (
        float(jnp.max(jnp.abs(o2 - r2))))

    # 3) bf16 input (dtype-aware sublane handling) on the folded path.
    x3 = jax.random.uniform(k3, (2, 32, 14, 14), dtype=jnp.bfloat16)
    o3 = jax.block_until_ready(generalized_mean_pooling(x3, norm=3.0))
    r3 = _reference(x3, norm=3.0)
    assert o3.shape == (2, 32, 1, 1), o3.shape
    assert jnp.allclose(o3.astype(jnp.float32), r3.astype(jnp.float32),
                        atol=1e-2, rtol=1e-2)

    # 4) Forced spatial chunking (tiny tile budget) + half-integer p (sqrt path),
    #    exercising the hw-axis "arbitrary" grid dim and the f32 accumulator.
    x4 = jax.random.uniform(k4, (2, 4, 16, 16), dtype=jnp.float32)
    o4 = jax.block_until_ready(
        generalized_mean_pooling(x4, norm=2.5, target_block_bytes=4096))
    r4 = _reference(x4, norm=2.5)
    assert o4.shape == (2, 4, 1, 1), o4.shape
    assert jnp.allclose(o4, r4, atol=1e-5, rtol=1e-5), (
        float(jnp.max(jnp.abs(o4 - r4))))

    print("KERNEL_OK")
</pallas_src>

<mosaic_0001>
module attributes {stable_mosaic.version = 11 : i64} {
  func.func @_gem_chunked_kernel(%arg0: i32, %arg1: i32, %arg2: memref<8x256xf32, #tpu.memory_space<vmem>>, %arg3: memref<8x1xf32, #tpu.memory_space<vmem>>, %arg4: memref<8x1xf32, #tpu.memory_space<vmem>>) attributes {dimension_semantics = [#tpu.dimension_semantics<parallel>, #tpu.dimension_semantics<arbitrary>], iteration_bounds = array<i64: 1, 1>, scalar_prefetch = 0 : i64, scratch_operands = 1 : i64, tpu.core_type = #tpu.core_type<tc>, window_params = [{transform_indices = @transform_0, window_bounds = array<i64: 8, 256>}, {transform_indices = @transform_1, window_bounds = array<i64: 8, 1>}]} {
    %c0_i32 = arith.constant 0 : i32
    %0 = arith.cmpi eq, %arg1, %c0_i32 : i32
    %1 = arith.extui %0 : i1 to i32
    %c0_i32_0 = arith.constant 0 : i32
    %2 = arith.cmpi ne, %1, %c0_i32_0 : i32
    scf.if %2 {
      %cst_9 = arith.constant 0.000000e+00 : f32
      %16 = vector.broadcast %cst_9 : f32 to vector<8x1xf32>
      %c0_10 = arith.constant 0 : index
      %c0_11 = arith.constant 0 : index
      %17 = vector.load %arg4[%c0_10, %c0_11] : memref<8x1xf32, #tpu.memory_space<vmem>>, vector<8x1xf32>
      tpu.vector_store %arg4[%c0_10, %c0_11], %16 {strides = array<i32>} : memref<8x1xf32, #tpu.memory_space<vmem>>, vector<8x1xf32>,
    } else {
    }
    %c0 = arith.constant 0 : index
    %c0_1 = arith.constant 0 : index
    %3 = vector.load %arg2[%c0, %c0_1] : memref<8x256xf32, #tpu.memory_space<vmem>>, vector<8x256xf32>
    %cst = arith.constant 9.99999997E-7 : f32
    %4 = vector.broadcast %cst : f32 to vector<8x256xf32>
    %5 = arith.maximumf %3, %4 : vector<8x256xf32>
    %6 = arith.mulf %5, %5 : vector<8x256xf32>
    %7 = arith.mulf %5, %6 : vector<8x256xf32>
    %c0_2 = arith.constant 0 : index
    %c0_3 = arith.constant 0 : index
    %8 = vector.load %arg4[%c0_2, %c0_3] : memref<8x1xf32, #tpu.memory_space<vmem>>, vector<8x1xf32>
    %cst_4 = arith.constant dense<0.000000e+00> : vector<8xf32>
    %9 = vector.multi_reduction <add>, %7, %cst_4 [1] : vector<8x256xf32> to vector<8xf32>
    %10 = vector.shape_cast %9 : vector<8xf32> to vector<8x1xf32>
    %11 = arith.addf %8, %10 : vector<8x1xf32>
    %c0_5 = arith.constant 0 : index
    %c0_6 = arith.constant 0 : index
    %12 = vector.load %arg4[%c0_5, %c0_6] : memref<8x1xf32, #tpu.memory_space<vmem>>, vector<8x1xf32>
    tpu.vector_store %arg4[%c0_5, %c0_6], %11 {strides = array<i32>} : memref<8x1xf32, #tpu.memory_space<vmem>>, vector<8x1xf32>,
    %c0_i32_7 = arith.constant 0 : i32
    %13 = arith.cmpi eq, %arg1, %c0_i32_7 : i32
    %14 = arith.extui %13 : i1 to i32
    %c0_i32_8 = arith.constant 0 : i32
    %15 = arith.cmpi ne, %14, %c0_i32_8 : i32
    scf.if %15 {
      %c0_9 = arith.constant 0 : index
      %c0_10 = arith.constant 0 : index
      %16 = vector.load %arg4[%c0_9, %c0_10] : memref<8x1xf32, #tpu.memory_space<vmem>>, vector<8x1xf32>
      %cst_11 = arith.constant 3.906250e-03 : f32
      %17 = vector.broadcast %cst_11 : f32 to vector<8x1xf32>
      %18 = arith.mulf %16, %17 : vector<8x1xf32>
      %cst_12 = arith.constant 0.333333343 : f32
      %19 = vector.broadcast %cst_12 : f32 to vector<8x1xf32>
      %20 = math.powf %18, %19 : vector<8x1xf32>
      %c0_13 = arith.constant 0 : index
      %c0_14 = arith.constant 0 : index
      %21 = vector.load %arg3[%c0_13, %c0_14] : memref<8x1xf32, #tpu.memory_space<vmem>>, vector<8x1xf32>
      tpu.vector_store %arg3[%c0_13, %c0_14], %20 {strides = array<i32>} : memref<8x1xf32, #tpu.memory_space<vmem>>, vector<8x1xf32>,
    } else {
    }
    return
  }
  func.func @transform_0(%arg0: i32, %arg1: i32) -> (i32, i32) {
    %c0_i32 = arith.constant 0 : i32
    return %arg0, %arg1 : i32, i32
  }
  func.func @transform_1(%arg0: i32, %arg1: i32) -> (i32, i32) {
    %c0_i32 = arith.constant 0 : i32
    %c0_i32_0 = arith.constant 0 : i32
    return %arg0, %c0_i32 : i32, i32
  }
}

</mosaic_0001>

<bundles_post_ra>
// kernel: tpu_custom_call.1
= control target key start
LH: loop header
LB: loop body
LE: loop exit
PB: predicated region body
PF: predicated region fallthrough
CT: control target
= control target key end

     0   :  { %6 = vsyncpa [#allocation4], 0  ;;  %s111_s9 = smov [#allocation3]   ;;  %s132_s0 = inlined_call_operand.hbm [shape: f32[8,256], index: 0, kind: input, shape index: {}]   ;;  %s133_s1 = inlined_call_operand.vmem [shape: f32[8,1], index: 1, kind: output, shape index: {}]  }
   0x1   :  { %s12_s8 = sshll.u32 %s132_s0, 4  ;;  %s14_s10 = sshll.u32 %s111_s9, 4  ;;  %s13_s8 = int_to_ptr.hbm [resolvable:$true] %s12_s8  ;;  %s15_s10 = int_to_ptr.vmem [resolvable:$true] %s14_s10 }
   0x2   :  { %17 = dma.hbm_to_vmem [thread:$0]  %s13_s8, 256, %s15_s10, [#allocation4]  }
   0x3   :  { %109 = dma.done.wait [#allocation4], 256  }
   0x4   :  { %110 = vsyncadd [#allocation4], 4294967040  ;;  %vm26_vm0 = vcmask 7168   ;;  %v112_v0 = vmov 0.0   ;;  %v28_v1 = vld [vmem:[#allocation3] sm:$0xff]  ;;  %v29_v2 = vld [vmem:[#allocation3 + $0x8] sm:$0xff] }
   0x5   :  { %27 = vst.msk [vmem:[#allocation2] sm:$0xff] %vm26_vm0, %v112_v0  ;;  %v30_v3 = vmax.f32 %v28_v1, 1e-06  ;;  %v31_v4 = vmax.f32 %v29_v2, 1e-06 }
   0x7   :  { %v32_v5 = vmul.f32 %v30_v3, %v30_v3  ;;  %v33_v6 = vmul.f32 %v31_v4, %v31_v4 }
   0x9   :  { %v34_v7 = vmul.f32 %v32_v5, %v30_v3  ;;  %v35_v8 = vmul.f32 %v33_v6, %v31_v4 }
   0xb   :  { %v37_v9 = vadd.f32 %v35_v8, %v34_v7 }
   0xc   :  { %v36_v10 = vld [vmem:[#allocation2] sm:$0xff] }
   0xd   :  { %38 = vadd.xlane.f32.xlu0 %v37_v9 }
  0x80   :  { %v39_v11 = vpop.xlane.xlu0 %38 }
  0x81   :  { %v40_v12 = vadd.f32 %v39_v11, %v36_v10 }
  0x83   :  { %42 = vst.msk [vmem:[#allocation2] sm:$0xff] %vm26_vm0, %v40_v12 }
  0x8a   :  { %v46_v13 = vld [vmem:[#allocation2] sm:$0xff] }
  0x8b   :  { %v47_v14 = vmul.f32 0.00390625, %v46_v13 }
  0x8d   :  { %v57_v15 = vand.u32 2147483647, %v47_v14  ;;  %v74_v27 = vand.u32 2147483648, %v47_v14  ;;  %vm56_vm3 = vcmp.lt.f32.partialorder %v47_v14, 0.0  ;;  %vm55_vm4 = vcmp.eq.f32.partialorder %v47_v14, 0.0 }
  0x8f   :  { %81 = vlog2.f32 %v57_v15  ;;  %vm71_vm1 = vweird.f32 %v57_v15  ;;  %vm73_vm2 = vcmp.eq.f32.partialorder %v57_v15, 0.0  ;;  %vm58_vm5 = vcmp.eq.f32.partialorder %v57_v15, inf }
  0x95   :  { %v82_v16 = vpop.eup %81 }
  0x96   :  { %v61_v17 = vmul.f32 -0.33333334, %v82_v16 }
  0x98   :  { %83 = vpow2.f32 %v61_v17 }
  0x9e   :  { %v84_v18 = vpop.eup %83 }
  0x9f   :  { %v63_v19 = vmul.f32 %v84_v18, %v84_v18 }
  0xa1   :  { %v64_v20 = vmul.f32 %v63_v19, %v57_v15 }
  0xa3   :  { %v65_v21 = vmul.f32 %v64_v20, %v63_v19 }
  0xa5   :  { %v66_v22 = vsub.f32 %v65_v21, %v84_v18 }
  0xa7   :  { %v67_v23 = vmul.f32 -0.33333334, %v66_v22 }
  0xa9   :  { %v68_v24 = vadd.f32 %v84_v18, %v67_v23 }
  0xab   :  { %v69_v25 = vmul.f32 %v68_v24, %v47_v14 }
  0xad   :  { %v70_v26 = vmul.f32 %v69_v25, %v68_v24 }
  0xaf   :  { %v72_v28 = vsel %vm71_vm1, %v47_v14, %v70_v26 }
  0xb0   :  { %v75_v29 = vsel %vm73_vm2, %v74_v27, %v72_v28 }
  0xb1   :  { %v76_v30 = vsel %vm56_vm3, nan, %v75_v29 }
  0xb2   :  { %v77_v31 = vsel %vm55_vm4, 0.0, %v76_v30 }
  0xb3   :  { %v78_v32 = vsel %vm58_vm5, inf, %v77_v31 }
  0xb4   :  { %49 = vst.msk [vmem:[%s133_s1] sm:$0xff] %vm26_vm0, %v78_v32 }
  0xb5   :  { %54 = vsyncpa [#allocation4], 1 }

</bundles_post_ra>
